<compile_context>
chip_gen: v6e
topology: v6e:2x2x1
jax: 0.10.0
libtpu: 0.0.40
codegen_flags: <defaults>
</compile_context>

<pallas_src>
import functools

import jax
import jax.numpy as jnp
from jax.experimental import pallas as pl
from jax.experimental.pallas import tpu as pltpu


# ----------------------------- in-kernel helpers -----------------------------

def _cmatmul(ar, ai, br, bi):
    """(ar + i*ai) @ (br + i*bi) via 3 real MXU matmuls (Gauss trick)."""
    dot = lambda a, b: jnp.dot(a, b, preferred_element_type=jnp.float32)
    t1 = dot(ar, br)
    t2 = dot(ai, bi)
    t3 = dot(ar + ai, br + bi)
    return t1 - t2, t3 - t1 - t2


def _fft2_planes(xr, xi, fr, fi, gr, gi):
    """Centered ortho fft2 as dense matmuls: (F_H @ X) @ F_W (matrices symmetric)."""
    tr, ti = _cmatmul(fr, fi, xr, xi)
    return _cmatmul(tr, ti, gr, gi)


def _ifft2_planes(xr, xi, fr, fi, gr, gi):
    """Centered ortho ifft2: inverse DFT matrix = conj(forward) -> conj/conj trick."""
    yr, yi = _fft2_planes(xr, -xi, fr, fi, gr, gi)
    return yr, -yi


# --------------------------------- kernels -----------------------------------

def _fwd_fft_kernel(pred_r, pred_i, fr, fi, gr, gi, k_r, k_i):
    """Per-batch forward FFT of the image-domain prediction (computed once)."""
    kr, ki = _fft2_planes(pred_r[0], pred_i[0],
                          fr[...], fi[...], gr[...], gi[...])
    k_r[0] = kr
    k_i[0] = ki


def _dc_chain_kernel(k_r, k_i, ref_r, ref_i, mask, fr, fi, gr, gi, w,
                     out_r, out_i, prev_r, prev_i):
    """All num_blocks SERANetDC steps for one (batch, coil) tile.

    Grid = (B, C, NB) with the block axis innermost/"arbitrary"; `prev` is carried
    across blocks in VMEM scratch (never touches HBM between blocks).
    """
    n = pl.program_id(2)

    rr = ref_r[0, 0]          # [H, W]
    ri = ref_i[0, 0]

    @pl.when(n == 0)
    def _():
        # prev_prediction starts as ref_kspace for the first DC block.
        prev_r[...] = rr
        prev_i[...] = ri

    kr = k_r[0]               # cached fft2c(pred) for this batch
    ki = k_i[0]
    m = mask[0] != 0.0        # [H, W] bool
    wt = w[n]                 # per-block dc_weight from SMEM

    sdr = jnp.where(m, kr - rr, 0.0) * wt
    sdi = jnp.where(m, ki - ri, 0.0) * wt
    nkr = prev_r[...] - sdr - kr
    nki = prev_i[...] - sdi - ki

    our, oui = _ifft2_planes(nkr, nki, fr[...], fi[...], gr[...], gi[...])
    out_r[0, 0, 0] = our
    out_i[0, 0, 0] = oui
    prev_r[...] = our
    prev_i[...] = oui


# ------------------------------ pallas_call setup -----------------------------

def _centered_dft_matrix(n):
    """M such that M @ x == fftshift(fft(ifftshift(x), norm='ortho')). Symmetric."""
    eye = jnp.eye(n, dtype=jnp.complex64)
    x = jnp.fft.ifftshift(eye, axes=0)
    x = jnp.fft.fft(x, axis=0, norm="ortho")
    m = jnp.fft.fftshift(x, axes=0)
    return m.real.astype(jnp.float32), m.imag.astype(jnp.float32)


@functools.lru_cache(maxsize=None)
def _make_fwd_fft_call(B, H, W):
    spec_img = pl.BlockSpec((1, H, W), lambda b: (b, 0, 0))
    spec_hh = pl.BlockSpec((H, H), lambda b: (0, 0))
    spec_ww = pl.BlockSpec((W, W), lambda b: (0, 0))
    return pl.pallas_call(
        _fwd_fft_kernel,
        out_shape=(jax.ShapeDtypeStruct((B, H, W), jnp.float32),
                   jax.ShapeDtypeStruct((B, H, W), jnp.float32)),
        grid=(B,),
        in_specs=[spec_img, spec_img, spec_hh, spec_hh, spec_ww, spec_ww],
        out_specs=(spec_img, spec_img),
        compiler_params=pltpu.CompilerParams(
            dimension_semantics=("parallel",)),
    )


@functools.lru_cache(maxsize=None)
def _make_dc_chain_call(B, C, H, W, NB):
    spec_bhw = pl.BlockSpec((1, H, W), lambda b, c, n: (b, 0, 0))
    spec_bchw = pl.BlockSpec((1, 1, H, W), lambda b, c, n: (b, c, 0, 0))
    spec_hh = pl.BlockSpec((H, H), lambda b, c, n: (0, 0))
    spec_ww = pl.BlockSpec((W, W), lambda b, c, n: (0, 0))
    spec_out = pl.BlockSpec((1, 1, 1, H, W), lambda b, c, n: (n, b, c, 0, 0))
    spec_smem = pl.BlockSpec(memory_space=pltpu.MemorySpace.SMEM)
    return pl.pallas_call(
        _dc_chain_kernel,
        out_shape=(jax.ShapeDtypeStruct((NB, B, C, H, W), jnp.float32),
                   jax.ShapeDtypeStruct((NB, B, C, H, W), jnp.float32)),
        grid=(B, C, NB),
        in_specs=[spec_bhw, spec_bhw,        # cached fft2c(pred)  (r, i)
                  spec_bchw, spec_bchw,      # ref_kspace          (r, i)
                  spec_bhw,                  # mask
                  spec_hh, spec_hh,          # F_H (r, i)
                  spec_ww, spec_ww,          # F_W (r, i)
                  spec_smem],                # dc_weights [NB] in SMEM
        out_specs=(spec_out, spec_out),
        scratch_shapes=[pltpu.VMEM((H, W), jnp.float32),   # prev real carry
                        pltpu.VMEM((H, W), jnp.float32)],  # prev imag carry
        compiler_params=pltpu.CompilerParams(
            dimension_semantics=("parallel", "parallel", "arbitrary")),
    )


# --------------------------------- module ------------------------------------

class SERANetReconstructionBlockPallas:
    """JAX/Pallas equivalent of SERANetReconstructionBlock (identity recon model)."""

    def __init__(self, num_reconstruction_blocks, fft_centered=True,
                 fft_normalization="ortho", spatial_dims=(-2, -1), coil_dim=1,
                 coil_combination_method="SENSE"):
        assert fft_centered and fft_normalization == "ortho"
        self.num_blocks = num_reconstruction_blocks
        # SERANetDC: self.dc_weight = nn.Parameter(torch.ones(1)), one per block.
        self.dc_weights = [jnp.ones((1,), jnp.float32)
                           for _ in range(num_reconstruction_blocks)]

    def __call__(self, pred, ref_kspace, sensitivity_maps, mask):
        del sensitivity_maps  # only used by the 'cascadenet' step branch
        B, C, H, W, _ = ref_kspace.shape
        NB = self.num_blocks

        pred = pred.astype(jnp.float32)
        ref_kspace = ref_kspace.astype(jnp.float32)
        pred_r, pred_i = pred[..., 0], pred[..., 1]
        ref_r, ref_i = ref_kspace[..., 0], ref_kspace[..., 1]
        mask2d = mask[:, 0, :, :, 0].astype(jnp.float32)      # [B, H, W]

        fr, fi = _centered_dft_matrix(H)
        gr, gi = _centered_dft_matrix(W)
        weights = jnp.concatenate(
            [w.reshape(1) for w in self.dc_weights]).astype(jnp.float32)

        # Forward FFT of pred: batch-only dependence -> computed once per batch.
        k_r, k_i = _make_fwd_fft_call(B, H, W)(pred_r, pred_i, fr, fi, gr, gi)

        # All reconstruction blocks fused into one pallas_call.
        out_r, out_i = _make_dc_chain_call(B, C, H, W, NB)(
            k_r, k_i, ref_r, ref_i, mask2d, fr, fi, gr, gi, weights)

        outs = jnp.stack([out_r, out_i], axis=-1)              # [NB, B, C, H, W, 2]
        return [outs[n] for n in range(NB)]


# ------------------------- pure-JAX reference -------------------------

def _fft2c(x):
    x = jnp.fft.ifftshift(x, axes=(-2, -1))
    x = jnp.fft.fftn(x, axes=(-2, -1), norm="ortho")
    return jnp.fft.fftshift(x, axes=(-2, -1))


def _ifft2c(x):
    x = jnp.fft.ifftshift(x, axes=(-2, -1))
    x = jnp.fft.ifftn(x, axes=(-2, -1), norm="ortho")
    return jnp.fft.fftshift(x, axes=(-2, -1))


def _reference(pred, ref_kspace, mask, dc_weights):
    pred_c = pred[..., 0] + 1j * pred[..., 1]              # [B, H, W]
    ref_c = ref_kspace[..., 0] + 1j * ref_kspace[..., 1]   # [B, C, H, W]
    mask_b = mask[:, :, :, :, 0] != 0                      # [B, 1, H, W]
    prev = ref_c
    outs = []
    for w in dc_weights:
        k = _fft2c(pred_c)[:, None]                        # [B, 1, H, W]
        soft_dc = jnp.where(mask_b, k - ref_c, 0.0 + 0.0j) * w[0]
        newk = prev - soft_dc - k
        out = _ifft2c(newk)
        prev = out
        outs.append(jnp.stack([out.real, out.imag], axis=-1).astype(jnp.float32))
    return outs


if __name__ == "__main__":
    B, C, H, W = 2, 4, 16, 16
    num_blocks = 2

    key = jax.random.PRNGKey(0)
    k1, k2, k3, k4 = jax.random.split(key, 4)
    pred = jax.random.normal(k1, (B, H, W, 2), dtype=jnp.float32)
    ref_kspace = jax.random.normal(k2, (B, C, H, W, 2), dtype=jnp.float32)
    sensitivity_maps = jax.random.normal(k3, (B, C, H, W, 2), dtype=jnp.float32)
    mask = (jax.random.uniform(k4, (B, 1, H, W, 1)) < 0.5).astype(jnp.float32)

    model = SERANetReconstructionBlockPallas(num_reconstruction_blocks=num_blocks)
    outs = model(pred, ref_kspace, sensitivity_maps, mask)
    outs = [jax.block_until_ready(o) for o in outs]

    refs = _reference(pred, ref_kspace, mask, model.dc_weights)
    for o, r in zip(outs, refs):
        assert o.shape == (B, C, H, W, 2)
        err = float(jnp.max(jnp.abs(o - r)))
        assert err < 2e-3, f"mismatch vs reference: max abs err {err}"

    print("KERNEL_OK")
</pallas_src>

<mosaic_0001>
module attributes {stable_mosaic.version = 11 : i64} {
  func.func @_fwd_fft_kernel(%arg0: i32, %arg1: memref<1x16x16xf32, #tpu.memory_space<vmem>>, %arg2: memref<1x16x16xf32, #tpu.memory_space<vmem>>, %arg3: memref<16x16xf32, #tpu.memory_space<vmem>>, %arg4: memref<16x16xf32, #tpu.memory_space<vmem>>, %arg5: memref<16x16xf32, #tpu.memory_space<vmem>>, %arg6: memref<16x16xf32, #tpu.memory_space<vmem>>, %arg7: memref<1x16x16xf32, #tpu.memory_space<vmem>>, %arg8: memref<1x16x16xf32, #tpu.memory_space<vmem>>) attributes {dimension_semantics = [#tpu.dimension_semantics<parallel>], iteration_bounds = array<i64: 2>, scalar_prefetch = 0 : i64, scratch_operands = 0 : i64, tpu.core_type = #tpu.core_type<tc>, window_params = [{transform_indices = @transform_0, window_bounds = array<i64: 1, 16, 16>}, {transform_indices = @transform_1, window_bounds = array<i64: 1, 16, 16>}, {pipeline_mode = #tpu.pipeline_mode<synchronous>, transform_indices = @transform_2, window_bounds = array<i64: 16, 16>}, {pipeline_mode = #tpu.pipeline_mode<synchronous>, transform_indices = @transform_3, window_bounds = array<i64: 16, 16>}, {pipeline_mode = #tpu.pipeline_mode<synchronous>, transform_indices = @transform_4, window_bounds = array<i64: 16, 16>}, {pipeline_mode = #tpu.pipeline_mode<synchronous>, transform_indices = @transform_5, window_bounds = array<i64: 16, 16>}, {transform_indices = @transform_6, window_bounds = array<i64: 1, 16, 16>}, {transform_indices = @transform_7, window_bounds = array<i64: 1, 16, 16>}]} {
    %c0 = arith.constant 0 : index
    %c0_0 = arith.constant 0 : index
    %c0_1 = arith.constant 0 : index
    %0 = vector.load %arg1[%c0, %c0_0, %c0_1] : memref<1x16x16xf32, #tpu.memory_space<vmem>>, vector<1x16x16xf32>
    %1 = vector.shape_cast %0 : vector<1x16x16xf32> to vector<16x16xf32>
    %c0_2 = arith.constant 0 : index
    %c0_3 = arith.constant 0 : index
    %c0_4 = arith.constant 0 : index
    %2 = vector.load %arg2[%c0_2, %c0_3, %c0_4] : memref<1x16x16xf32, #tpu.memory_space<vmem>>, vector<1x16x16xf32>
    %3 = vector.shape_cast %2 : vector<1x16x16xf32> to vector<16x16xf32>
    %c0_5 = arith.constant 0 : index
    %c0_6 = arith.constant 0 : index
    %4 = vector.load %arg3[%c0_5, %c0_6] : memref<16x16xf32, #tpu.memory_space<vmem>>, vector<16x16xf32>
    %c0_7 = arith.constant 0 : index
    %c0_8 = arith.constant 0 : index
    %5 = vector.load %arg4[%c0_7, %c0_8] : memref<16x16xf32, #tpu.memory_space<vmem>>, vector<16x16xf32>
    %c0_9 = arith.constant 0 : index
    %c0_10 = arith.constant 0 : index
    %6 = vector.load %arg5[%c0_9, %c0_10] : memref<16x16xf32, #tpu.memory_space<vmem>>, vector<16x16xf32>
    %c0_11 = arith.constant 0 : index
    %c0_12 = arith.constant 0 : index
    %7 = vector.load %arg6[%c0_11, %c0_12] : memref<16x16xf32, #tpu.memory_space<vmem>>, vector<16x16xf32>
    %cst = arith.constant dense<0.000000e+00> : vector<16x16xf32>
    %8 = tpu.matmul %4, %1, %cst {dimension_numbers = #tpu.dot_dimension_numbers<[1], [0], [0], [1], [0, 0, 1, 1], [], []>} : vector<16x16xf32>, vector<16x16xf32>, vector<16x16xf32> -> vector<16x16xf32>
    %cst_13 = arith.constant dense<0.000000e+00> : vector<16x16xf32>
    %9 = tpu.matmul %5, %3, %cst_13 {dimension_numbers = #tpu.dot_dimension_numbers<[1], [0], [0], [1], [0, 0, 1, 1], [], []>} : vector<16x16xf32>, vector<16x16xf32>, vector<16x16xf32> -> vector<16x16xf32>
    %10 = arith.addf %4, %5 : vector<16x16xf32>
    %11 = arith.addf %1, %3 : vector<16x16xf32>
    %cst_14 = arith.constant dense<0.000000e+00> : vector<16x16xf32>
    %12 = tpu.matmul %10, %11, %cst_14 {dimension_numbers = #tpu.dot_dimension_numbers<[1], [0], [0], [1], [0, 0, 1, 1], [], []>} : vector<16x16xf32>, vector<16x16xf32>, vector<16x16xf32> -> vector<16x16xf32>
    %13 = arith.subf %8, %9 : vector<16x16xf32>
    %14 = arith.subf %12, %8 : vector<16x16xf32>
    %15 = arith.subf %14, %9 : vector<16x16xf32>
    %cst_15 = arith.constant dense<0.000000e+00> : vector<16x16xf32>
    %16 = tpu.matmul %13, %6, %cst_15 {dimension_numbers = #tpu.dot_dimension_numbers<[1], [0], [0], [1], [0, 0, 1, 1], [], []>} : vector<16x16xf32>, vector<16x16xf32>, vector<16x16xf32> -> vector<16x16xf32>
    %cst_16 = arith.constant dense<0.000000e+00> : vector<16x16xf32>
    %17 = tpu.matmul %15, %7, %cst_16 {dimension_numbers = #tpu.dot_dimension_numbers<[1], [0], [0], [1], [0, 0, 1, 1], [], []>} : vector<16x16xf32>, vector<16x16xf32>, vector<16x16xf32> -> vector<16x16xf32>
    %18 = arith.addf %13, %15 : vector<16x16xf32>
    %19 = arith.addf %6, %7 : vector<16x16xf32>
    %cst_17 = arith.constant dense<0.000000e+00> : vector<16x16xf32>
    %20 = tpu.matmul %18, %19, %cst_17 {dimension_numbers = #tpu.dot_dimension_numbers<[1], [0], [0], [1], [0, 0, 1, 1], [], []>} : vector<16x16xf32>, vector<16x16xf32>, vector<16x16xf32> -> vector<16x16xf32>
    %21 = arith.subf %16, %17 : vector<16x16xf32>
    %22 = arith.subf %20, %16 : vector<16x16xf32>
    %23 = arith.subf %22, %17 : vector<16x16xf32>
    %c0_18 = arith.constant 0 : index
    %c0_19 = arith.constant 0 : index
    %c0_20 = arith.constant 0 : index
    %24 = vector.load %arg7[%c0_18, %c0_19, %c0_20] : memref<1x16x16xf32, #tpu.memory_space<vmem>>, vector<1x16x16xf32>
    %25 = vector.shape_cast %24 : vector<1x16x16xf32> to vector<16x16xf32>
    %26 = vector.shape_cast %21 : vector<16x16xf32> to vector<1x16x16xf32>
    tpu.vector_store %arg7[%c0_18, %c0_19, %c0_20], %26 {strides = array<i32>} : memref<1x16x16xf32, #tpu.memory_space<vmem>>, vector<1x16x16xf32>,
    %c0_21 = arith.constant 0 : index
    %c0_22 = arith.constant 0 : index
    %c0_23 = arith.constant 0 : index
    %27 = vector.load %arg8[%c0_21, %c0_22, %c0_23] : memref<1x16x16xf32, #tpu.memory_space<vmem>>, vector<1x16x16xf32>
    %28 = vector.shape_cast %27 : vector<1x16x16xf32> to vector<16x16xf32>
    %29 = vector.shape_cast %23 : vector<16x16xf32> to vector<1x16x16xf32>
    tpu.vector_store %arg8[%c0_21, %c0_22, %c0_23], %29 {strides = array<i32>} : memref<1x16x16xf32, #tpu.memory_space<vmem>>, vector<1x16x16xf32>,
    return
  }
  func.func @transform_0(%arg0: i32) -> (i32, i32, i32) {
    %c0_i32 = arith.constant 0 : i32
    %c0_i32_0 = arith.constant 0 : i32
    %c0_i32_1 = arith.constant 0 : i32
    return %arg0, %c0_i32, %c0_i32_0 : i32, i32, i32
  }
  func.func @transform_1(%arg0: i32) -> (i32, i32, i32) {
    %c0_i32 = arith.constant 0 : i32
    %c0_i32_0 = arith.constant 0 : i32
    %c0_i32_1 = arith.constant 0 : i32
    return %arg0, %c0_i32, %c0_i32_0 : i32, i32, i32
  }
  func.func @transform_2(%arg0: i32) -> (i32, i32) {
    %c0_i32 = arith.constant 0 : i32
    %c0_i32_0 = arith.constant 0 : i32
    %c0_i32_1 = arith.constant 0 : i32
    return %c0_i32, %c0_i32_0 : i32, i32
  }
  func.func @transform_3(%arg0: i32) -> (i32, i32) {
    %c0_i32 = arith.constant 0 : i32
    %c0_i32_0 = arith.constant 0 : i32
    %c0_i32_1 = arith.constant 0 : i32
    return %c0_i32, %c0_i32_0 : i32, i32
  }
  func.func @transform_4(%arg0: i32) -> (i32, i32) {
    %c0_i32 = arith.constant 0 : i32
    %c0_i32_0 = arith.constant 0 : i32
    %c0_i32_1 = arith.constant 0 : i32
    return %c0_i32, %c0_i32_0 : i32, i32
  }
  func.func @transform_5(%arg0: i32) -> (i32, i32) {
    %c0_i32 = arith.constant 0 : i32
    %c0_i32_0 = arith.constant 0 : i32
    %c0_i32_1 = arith.constant 0 : i32
    return %c0_i32, %c0_i32_0 : i32, i32
  }
  func.func @transform_6(%arg0: i32) -> (i32, i32, i32) {
    %c0_i32 = arith.constant 0 : i32
    %c0_i32_0 = arith.constant 0 : i32
    %c0_i32_1 = arith.constant 0 : i32
    return %arg0, %c0_i32, %c0_i32_0 : i32, i32, i32
  }
  func.func @transform_7(%arg0: i32) -> (i32, i32, i32) {
    %c0_i32 = arith.constant 0 : i32
    %c0_i32_0 = arith.constant 0 : i32
    %c0_i32_1 = arith.constant 0 : i32
    return %arg0, %c0_i32, %c0_i32_0 : i32, i32, i32
  }
}

</mosaic_0001>

<bundles_post_ra>
// kernel: tpu_custom_call.1
= control target key start
LH: loop header
LB: loop body
LE: loop exit
PB: predicated region body
PF: predicated region fallthrough
CT: control target
= control target key end

     0   :  { %s2008_s0 = inlined_call_operand.hbm [shape: f32[2,16,16], index: 0, kind: input, shape index: {}]   ;;  %s2009_s1 = inlined_call_operand.hbm [shape: f32[2,16,16], index: 1, kind: input, shape index: {}]   ;;  %s2010_s2 = inlined_call_operand.hbm [shape: f32[16,16], index: 2, kind: input, shape index: {}]   ;;  %s2011_s3 = inlined_call_operand.hbm [shape: f32[16,16], index: 3, kind: input, shape index: {}]   ;;  %s2012_s4 = inlined_call_operand.hbm [shape: f32[16,16], index: 4, kind: input, shape index: {}]   ;;  %s2013_s5 = inlined_call_operand.hbm [shape: f32[16,16], index: 5, kind: input, shape index: {}]   ;;  %s2014_s6 = inlined_call_operand.hbm [shape: f32[2,16,16], index: 6, kind: output, shape index: {0}]   ;;  %s2015_s7 = inlined_call_operand.hbm [shape: f32[2,16,16], index: 7, kind: output, shape index: {1}]  }
   0x1   :  { %2023 = sst [smem:[#allocation23_spill]] %s2008_s0 }
   0x2   :  { %2024 = sst [smem:[#allocation24_spill]] %s2010_s2 }
   0x3   :  { %2025 = sst [smem:[#allocation25_spill]] %s2011_s3 }
   0x4   :  { %2026 = sst [smem:[#allocation26_spill]] %s2012_s4 }
   0x5   :  { %13 = vsyncpa [#allocation3], 0 }
   0x6   :  { %15 = vsyncpa [#allocation3 + $0x1], 0 }
   0x7   :  { %16 = vsyncpa [#allocation6], 0 }
   0x8   :  { %18 = vsyncpa [#allocation6 + $0x1], 0 }
   0x9   :  { %19 = vsyncpa [#allocation9], 0 }
   0xa   :  { %20 = vsyncpa [#allocation12], 0 }
   0xb   :  { %21 = vsyncpa [#allocation4], 0 }
   0xc   :  { %23 = vsyncpa [#allocation4 + $0x1], 0 }
   0xd   :  { %24 = vsyncpa [#allocation15], 0 }
   0xe   :  { %26 = vsyncpa [#allocation15 + $0x1], 0  ;;  %s1667_s24 = smov 0   ;;  %s1669_s25 = smov 0  }
   0xf   :  { %s1671_s26 = smov 0   ;;  %s1673_s27 = smov 0  }
  0x10 LB: > { %s1688_s28 = sadd.s32 4294967295, %s1613_s27   ;;  %s1130_s29 = sadd.s32 4294967294, %s1613_s27   ;;  %s1613_s27 = sphi %s1673_s27, %s2052_s27   ;;  %s1609_s26 = sphi %s1671_s26, %s2051_s26   ;;  %s1605_s25 = sphi %s1669_s25, %s2050_s25   ;;  %s1601_s24 = sphi %s1667_s24, %s2049_s24  }
  0x11   : > { %p52_p0 = scmp.ne.s32.totalorder %s1605_s25, %s1601_s24  ;;  %p2016_p1 = scmp.eq.s32.totalorder %s1688_s28, 0 }
  0x12   : > { %p186_p2 = scmp.eq.s32.totalorder %s1688_s28, 1  ;;  %p192_p3 = scmp.eq.s32.totalorder %s1130_s29, 1 }
  0x13   : > { %p1697_p4 = por %p2016_p1, %p52_p0  ;;  %p1131_p5 = scmp.ge.s32.totalorder %s1613_s27, 1 }
  0x14   : > { %p1702_p6 = por %p192_p3, %p52_p0  ;;  %p225_p7 = scmp.lt.s32.totalorder %s1613_s27, 3 }
  0x15   : > { %s2027_s30 = scalar_select %p1697_p4, 1, 0 }
  0x16   : > { %s2028_s8 = scalar_select %p1702_p6, 1, 0 }
  0x17   : > { %p1707_p8 = pnand %p1131_p5, %p225_p7  ;;  %s1615_s10 = smov [#allocation7]  }
  0x18   : > { %s237_s11 = sshll.u32 %s1615_s10, 4  ;;  %s1616_s13 = smov [#allocation8]   ;;  %s238_s11 = int_to_ptr.vmem [resolvable:$true] %s237_s11 }
  0x19   : > { %p1266_p9 = pneg %p1707_p8  ;;  %s250_s14 = sshll.u32 %s1616_s13, 4  ;;  %s251_s14 = int_to_ptr.vmem [resolvable:$true] %s250_s14 }
  0x1a   : > { %s1617_s15 = smov [#allocation10]   ;;  %s1354_s17 = scalar_lea.vmem %s238_s11, 256 }
  0x1b   : > { %p1716_p11 = pnand %p1266_p9, %p2016_p1  ;;  %s263_s16 = sshll.u32 %s1617_s15, 4  ;;  %s264_s16 = int_to_ptr.vmem [resolvable:$true] %s263_s16 }
  0x1c   : > { %p1355_p13 = scmp.ne.s32.totalorder %s238_s11, %s1354_s17  ;;  %p1362_p5 = scmp.lt.s32.totalorder %s238_s11, %s238_s11 }
  0x1d   : > { %p1345_p12 = pneg %p1716_p11  ;;  %p1363_p7 = scmp.lt.s32.totalorder %s1354_s17, %s1354_s17 }
  0x1f   : > { %p1357_p0 = pnand %p1355_p13, %p1345_p12  ;;  %p1364_p9 = por %p1363_p7, %p1362_p5 }
  0x21   : > { %p1358_p3 = pneg %p1357_p0 }
  0x23   : > { %p1365_p10 = pnand %p1364_p9, %p1358_p3 }
  0x25   : > { %1368 = shalt.err (!%p1365_p10)
}
  0x26   : > { %s2017_s18 = smov 128   ;;  %s2019_s19 = smov 8  }
  0x27   : > { %s2031_s2 = sld [smem:[#allocation24_spill]]  ;;  %s1380_s22 = scalar_lea.vmem %s251_s14, 256 }
  0x28   : > { %p1381_p13 = scmp.ne.s32.totalorder %s251_s14, %s1380_s22  ;;  %p1388_p3 = scmp.lt.s32.totalorder %s251_s14, %s251_s14 }
  0x29   : > { %p1389_p10 = scmp.lt.s32.totalorder %s1380_s22, %s1380_s22 }
  0x2a   : > { %p1383_p0 = pnand %p1381_p13, %p1345_p12 }
  0x2b   : > { %p1390_p7 = por %p1389_p10, %p1388_p3 }
  0x2c   : > { %p1384_p5 = pneg %p1383_p0 }
  0x2d   : > { %1269 = dma.hbm_to_vmem [thread:$0]  (!%p1716_p11), %s2031_s2, 256, %s238_s11, [#allocation6], %s2017_s18, %s2017_s18, %s2019_s19  }
  0x2e   : > { %p1391_p9 = pnand %p1390_p7, %p1384_p5 }
  0x30   : > { %1394 = shalt.err (!%p1391_p9)
}
  0x31   : > { %s2032_s3 = sld [smem:[#allocation25_spill]]  ;;  %s1406_s10 = scalar_lea.vmem %s264_s16, 256 }
  0x32   : > { %p1407_p1 = scmp.ne.s32.totalorder %s264_s16, %s1406_s10  ;;  %p1414_p3 = scmp.lt.s32.totalorder %s264_s16, %s264_s16 }
  0x33   : > { %p1415_p5 = scmp.lt.s32.totalorder %s1406_s10, %s1406_s10 }
  0x34   : > { %p1409_p13 = pnand %p1407_p1, %p1345_p12 }
  0x35   : > { %p1416_p10 = por %p1415_p5, %p1414_p3 }
  0x36   : > { %p1410_p0 = pneg %p1409_p13 }
  0x37   : > { %1272 = dma.hbm_to_vmem [thread:$0]  (!%p1716_p11), %s2032_s3, 256, %s251_s14, [#allocation9], %s2017_s18, %s2017_s18, %s2019_s19  }
  0x38   : > { %p1417_p7 = pnand %p1416_p10, %p1410_p0 }
  0x3a   : > { %1420 = shalt.err (!%p1417_p7)
}
  0x3b   : > { %s2033_s4 = sld [smem:[#allocation26_spill]]  ;;  %s1620_s14 = smov [#allocation11]  }
  0x3c   : > { %s276_s15 = sshll.u32 %s1620_s14, 4  ;;  %s277_s15 = int_to_ptr.vmem [resolvable:$true] %s276_s15 }
  0x3d   : > { %s1432_s17 = scalar_lea.vmem %s277_s15, 256  ;;  %p1440_p0 = scmp.lt.s32.totalorder %s277_s15, %s277_s15 }
  0x3e   : > { %p1433_p1 = scmp.ne.s32.totalorder %s277_s15, %s1432_s17  ;;  %p1441_p3 = scmp.lt.s32.totalorder %s1432_s17, %s1432_s17 }
  0x40   : > { %p1435_p9 = pnand %p1433_p1, %p1345_p12  ;;  %p1442_p5 = por %p1441_p3, %p1440_p0 }
  0x41   : > { %1275 = dma.hbm_to_vmem [thread:$0]  (!%p1716_p11), %s2033_s4, 256, %s264_s16, [#allocation9], %s2017_s18, %s2017_s18, %s2019_s19  }
  0x42   : > { %p1436_p13 = pneg %p1435_p9 }
  0x44   : > { %p1443_p10 = pnand %p1442_p5, %p1436_p13 }
  0x46   : > { %1446 = shalt.err (!%p1443_p10)
}
  0x47   : > { %1278 = dma.hbm_to_vmem [thread:$0]  (!%p1716_p11), %s2013_s5, 256, %s277_s15, [#allocation12], %s2017_s18, %s2017_s18, %s2019_s19  }
  0x48   : > { %s1767_s21 = sadd.s32 1, %s1613_s27   ;;  %s39_s12 = sadd.s32 1, %s1609_s26 }
  0x49   : > { %s36_s22 = ssub.s32 %s1613_s27, %s1767_s21  ;;  %p46_p12 = scmp.ne.s32.totalorder %s1609_s26, %s1605_s25 }
  0x4a   : > { %p37_p7 = scmp.eq.s32.totalorder %s36_s22, 0  ;;  %p47_p1 = scmp.eq.s32.totalorder %s1613_s27, 0 }
  0x4b   : > { %p1777_p9 = por %p186_p2, %p46_p12  ;;  %p1297_p13 = scmp.lt.s32.totalorder %s1613_s27, 2 }
  0x4c   : > { %s1783_s29 = scalar_select %p37_p7, %s1609_s26, %s39_s12  }
  0x4d   : > { %s2034_s23 = scalar_select %p1777_p9, 1, 0 }
  0x4e   : > { %p48_p0 = por %p47_p1, %p46_p12  ;;  %s290_s10 = sand.u32 1, %s1609_s26  }
  0x4f   : > { %s1137_s11 = sshll.u32 %s290_s10, 4  ;;  %s1172_s13 = sshll.u32 %s1613_s27, 8 }
  0x50   : > { %s2035_s0 = sld [smem:[#allocation23_spill]]  ;;  %s294_s16 = scalar_lea.vmem [#allocation2], %s1137_s11 }
  0x51   : > { %s301_s20 = sshll.u32 %s294_s16, 4  ;;  %p1794_p2 = pnand %p1297_p13, %p48_p0  ;;  %s1792_s20 = int_to_ptr.vmem [resolvable:$true] %s301_s20 }
  0x52   : > { %s1801_s19 = scalar_lea.hbm %s2009_s1, %s1172_s13  ;;  %s315_s14 = scalar_lea.vmem [#allocation5], %s1137_s11 }
  0x53   : > { %s1803_s15 = sshll.u32 %s315_s14, 4  ;;  %s1805_s2 = scalar_lea.sflag [#allocation3], %s290_s10  ;;  %s1836_s15 = int_to_ptr.vmem [resolvable:$true] %s1803_s15 }
  0x54   : > { %p1449_p3 = pneg %p1794_p2 }
  0x56   : > { %s1790_s17 = scalar_lea.hbm %s2035_s0, %s1172_s13  ;;  %s1452_s18 = scalar_lea.hbm %s2035_s0, 512 }
  0x57   : > { %s1447_s3 = scalar_lea.hbm %s1790_s17, 256  ;;  %p1453_p12 = scmp.lt.s32.totalorder %s1790_s17, %s2035_s0 }
  0x58   : > { %p1448_p11 = scmp.ne.s32.totalorder %s1790_s17, %s1447_s3  ;;  %p1454_p7 = scmp.lt.s32.totalorder %s1452_s18, %s1447_s3 }
  0x5a   : > { %p1450_p5 = pnand %p1449_p3, %p1448_p11  ;;  %p1455_p1 = por %p1454_p7, %p1453_p12 }
  0x5c   : > { %p1451_p10 = pneg %p1450_p5 }
  0x5e   : > { %p1456_p13 = pnand %p1455_p1, %p1451_p10 }
  0x60   : > { %1459 = shalt.err (!%p1456_p13)
}
  0x61   : > { %s1460_s10 = scalar_lea.vmem %s1792_s20, 256  ;;  %s1621_s4 = smov [#allocation2]  }
  0x62   : > { %p1461_p0 = scmp.ne.s32.totalorder %s1792_s20, %s1460_s10  ;;  %s1465_s11 = sshll.u32 %s1621_s4, 4  ;;  %s1466_s11 = int_to_ptr.vmem [resolvable:$false] %s1465_s11 }
  0x63   : > { %s1467_s14 = scalar_lea.vmem %s1466_s11, 512  ;;  %p1468_p6 = scmp.lt.s32.totalorder %s1792_s20, %s1466_s11 }
  0x64   : > { %p1463_p11 = pnand %p1461_p0, %p1449_p3  ;;  %p1469_p9 = scmp.lt.s32.totalorder %s1467_s14, %s1460_s10 }
  0x66   : > { %p1464_p5 = pneg %p1463_p11  ;;  %p1470_p4 = por %p1469_p9, %p1468_p6 }
  0x68   : > { %p1471_p12 = pnand %p1470_p4, %p1464_p5 }
  0x6a   : > { %1474 = shalt.err (!%p1471_p12)
}
  0x6b   : > { %s2037_s3 = smov 8   ;;  %s2038_s16 = smov 128  }
  0x6c   : > { %1282 = dma.hbm_to_vmem [thread:$0]  (!%p1794_p2), %s1790_s17, 256, %s1792_s20, %s1805_s2, %s2038_s16, %s2038_s16, %s2037_s3  }
  0x6d   : > { %s311_s18 = sand.u32 1, %s1613_s27   ;;  %s1475_s13 = scalar_lea.hbm %s1801_s19, 256 }
  0x6e   : > { %s312_s12 = scalar_lea.sflag [#allocation6], %s311_s18  ;;  %p1476_p4 = scmp.ne.s32.totalorder %s1801_s19, %s1475_s13 }
  0x6f   : > { %s1480_s11 = scalar_lea.hbm %s2009_s1, 512  ;;  %p1481_p10 = scmp.lt.s32.totalorder %s1801_s19, %s2009_s1 }
  0x70   : > { %p1478_p6 = pnand %p1476_p4, %p1449_p3  ;;  %p1482_p7 = scmp.lt.s32.totalorder %s1480_s11, %s1475_s13 }
  0x72   : > { %p1479_p9 = pneg %p1478_p6  ;;  %p1483_p1 = por %p1482_p7, %p1481_p10 }
  0x74   : > { %p1484_p13 = pnand %p1483_p1, %p1479_p9 }
  0x76   : > { %1487 = shalt.err (!%p1484_p13)
}
  0x77   : > { %s1488_s2 = scalar_lea.vmem %s1836_s15, 256  ;;  %s1622_s17 = smov [#allocation5]  }
  0x78   : > { %p1489_p0 = scmp.ne.s32.totalorder %s1836_s15, %s1488_s2  ;;  %s1493_s20 = sshll.u32 %s1622_s17, 4  ;;  %s1494_s20 = int_to_ptr.vmem [resolvable:$false] %s1493_s20 }
  0x79   : > { %s1495_s18 = scalar_lea.vmem %s1494_s20, 512  ;;  %p1496_p12 = scmp.lt.s32.totalorder %s1836_s15, %s1494_s20 }
  0x7a   : > { %p1491_p11 = pnand %p1489_p0, %p1449_p3  ;;  %p1497_p4 = scmp.lt.s32.totalorder %s1495_s18, %s1488_s2 }
  0x7c   : > { %p1492_p5 = pneg %p1491_p11  ;;  %p1498_p6 = por %p1497_p4, %p1496_p12 }
  0x7e   : > { %p1499_p10 = pnand %p1498_p6, %p1492_p5 }
  0x80   : > { %1502 = shalt.err (!%p1499_p10)
}
  0x81   : > { %1285 = dma.hbm_to_vmem [thread:$0]  (!%p1794_p2), %s1801_s19, 256, %s1836_s15, %s312_s12, %s2038_s16, %s2038_s16, %s2037_s3  }
  0x82   : > { %334 = sbr.rel (%p1707_p8) target bundleno = 593 (0x251), region = 44  ;;  %s1867_s0 = sand.u32 (!%p1707_p8), 1, %s1605_s25  }
  0x83   : > { %s1870_s13 = sshll.u32 (!%p1707_p8), %s1867_s0, 4  ;;  %s337_s10 = scalar_lea.sflag (!%p1707_p8), [#allocation3], %s1867_s0 }
  0x84   : > { %s340_s22 = scalar_lea.vmem (!%p1707_p8), [#allocation2], %s1870_s13  ;;  %p2039_p3 = scmp.ne.s32.totalorder (!%p1707_p8), %s2027_s30, 0 }
  0x87   : > { %1572 = dma.done.wait (%p2039_p3), %s337_s10, 256  }
  0x88   : > { %1574 = vsyncadd (%p2039_p3), %s337_s10, 4294967040  ;;  %s345_s9 = sand.u32 1, %s1688_s28   ;;  %s349_s15 = scalar_lea.vmem [#allocation5], %s1870_s13 }
  0x89   : > { %s346_s19 = scalar_lea.sflag [#allocation6], %s345_s9 }
  0x8a   : > { %1576 = dma.done.wait (%p2039_p3), %s346_s19, 256  }
  0x8b   : > { %1578 = vsyncadd (%p2039_p3), %s346_s19, 4294967040  ;;  %p2040_p8 = scmp.eq.s32.totalorder %s1688_s28, 0 }
  0x8d   : > { %1580 = dma.done.wait (%p2040_p8), [#allocation6], 256   ;;  %p2041_p2 = pmov %p2040_p8 }
  0x8f   : > { %1582 = vsyncadd (%p2041_p2), [#allocation6], 4294967040  ;;  %p2042_p9 = pmov %p2041_p2 }
  0x90   : > { %p2043_p7 = pmov %p2041_p2 }
  0x91   : > { %1584 = dma.done.wait (%p2042_p9), [#allocation9], 512  }
  0x92   : > { %1586 = vsyncadd (%p2043_p7), [#allocation9], 4294966784  ;;  %p2044_p1 = pmov %p2041_p2 }
  0x94   : > { %1588 = dma.done.wait (%p2044_p1), [#allocation12], 256   ;;  %p2045_p13 = pmov %p2044_p1 }
  0x95   : > { %v407_v0 = vld [vmem:[%s340_s22 + $0x8] sm:$0xff]  ;;  %v406_v2 = vld [vmem:[%s340_s22] sm:$0xff]  ;;  %vm418_vm0 = vcmask 130048   ;;  %s1174_s30 = sshll.u32 %s1688_s28, 8  ;;  %s398_s3 = scalar_lea.vmem [#allocation13], %s1870_s13 }
  0x96   : > { %1590 = vsyncadd (%p2045_p13), [#allocation12], 4294967040  ;;  %v409_v1 = vld [vmem:[%s349_s15 + $0x8] sm:$0xff]  ;;  %1200 = vmatprep.subr.mxu0 %v407_v0  ;;  %v408_v3 = vld [vmem:[%s349_s15] sm:$0xff]  ;;  %s948_s16 = sshll.u32 %s398_s3, 4  ;;  %s1915_s11 = scalar_lea.hbm %s2014_s6, %s1174_s30  ;;  %s1917_s16 = int_to_ptr.vmem [resolvable:$true] %s948_s16 }
  0x97   : > { %1207 = vmatprep.subr.mxu1 %v409_v1  ;;  %v410_v4 = vld [vmem:[#allocation7] sm:$0xff]  ;;  %1201 = vmatpush3.msra.mxu0 %v407_v0  ;;  %v412_v5 = vld [vmem:[#allocation8] sm:$0xff]  ;;  %v411_v7 = vld [vmem:[#allocation7 + $0x8] sm:$0xff]  ;;  %v584_v9 = vadd.f32 %v409_v1, %v407_v0  ;;  %v583_v10 = vadd.f32 %v408_v3, %v406_v2  ;;  %s1921_s14 = scalar_lea.vmem [#allocation14], %s1870_s13  ;;  %s930_s17 = scalar_lea.sflag [#allocation4], %s1867_s0 }
  0x98   : > { %1208 = vmatpush3.msra.mxu1 %v409_v1  ;;  %1202 = vmatprep.subr.mxu0 %v406_v2  ;;  %v581_v6 = vadd.f32 %v412_v5, %v410_v4  ;;  %v413_v8 = vld [vmem:[#allocation8 + $0x8] sm:$0xff]  ;;  %v415_v12 = vld [vmem:[#allocation10 + $0x8] sm:$0xff]  ;;  %v414_v13 = vld [vmem:[#allocation10] sm:$0xff]  ;;  %s964_s2 = sshll.u32 %s1921_s14, 4  ;;  %s1503_s20 = scalar_lea.vmem %s1917_s16, 256  ;;  %s1962_s2 = int_to_ptr.vmem [resolvable:$true] %s964_s2 }
  0x99   : > { %1209 = vmatprep.subr.mxu1 %v408_v3  ;;  %1203 = vmatpush3.msra.mxu0 %v406_v2  ;;  %v582_v11 = vadd.f32 %v413_v8, %v411_v7  ;;  %v417_v14 = vld [vmem:[#allocation11 + $0x8] sm:$0xff]  ;;  %v416_v16 = vld [vmem:[#allocation11] sm:$0xff]  ;;  %p1504_p0 = scmp.ne.s32.totalorder %s1917_s16, %s1503_s20  ;;  %p2046_p11 = scmp.ne.s32.totalorder %s2034_s23, 0 }
  0x9a   : > { %1204 = vmatprep.mubr.msk.f32.mxu0 %vm418_vm0, %v410_v4  ;;  %1210 = vmatpush3.msra.mxu1 %v408_v3  ;;  %v837_v15 = vadd.f32 %v417_v14, %v415_v12  ;;  %v836_v17 = vadd.f32 %v416_v16, %v414_v13  ;;  %s1623_s18 = smov [#allocation13]  }
  0x9b   : > { %1211 = vmatprep.mubr.msk.f32.mxu1 %vm418_vm0, %v412_v5  ;;  %1205 = vmatmul.mubr.msk.f32.vlgmr.msra.gmra.mxu0 %vm418_vm0, %v411_v7  ;;  %p1505_p5 = pnand %p1504_p0, %p2046_p11  ;;  %s1507_s10 = sshll.u32 %s1623_s18, 4  ;;  %s1508_s10 = int_to_ptr.vmem [resolvable:$false] %s1507_s10 }
  0x9c   : > { %1212 = vmatmul.mubr.msk.f32.vlgmr.msra.gmra.mxu1 %vm418_vm0, %v413_v8  ;;  %1214 = vmatprep.subr.mxu0 %v584_v9  ;;  %s1509_s22 = scalar_lea.vmem %s1508_s10, 512  ;;  %p1510_p4 = scmp.lt.s32.totalorder %s1917_s16, %s1508_s10 }
  0x9d   : > { %1218 = vmatprep.mubr.msk.f32.mxu0 %vm418_vm0, %v581_v6  ;;  %1215 = vmatpush3.msra.mxu0 %v584_v9  ;;  %p1506_p12 = pneg %p1505_p5  ;;  %p1511_p6 = scmp.lt.s32.totalorder %s1509_s22, %s1503_s20 }
  0x9e   : > { %1216 = vmatprep.subr.mxu0 %v583_v10  ;;  %1221 = vmatprep.subr.mxu1 %v415_v12 }
  0x9f   : > { %1217 = vmatpush3.msra.mxu0 %v583_v10  ;;  %1222 = vmatpush3.msra.mxu1 %v415_v12  ;;  %p1512_p10 = por %p1511_p6, %p1510_p4 }
  0xa0   : > { %1219 = vmatmul.mubr.msk.f32.vlgmr.msra.gmra.mxu0 %vm418_vm0, %v582_v11  ;;  %1223 = vmatprep.subr.mxu1 %v414_v13 }
  0xa1   : > { %1224 = vmatpush3.msra.mxu1 %v414_v13  ;;  %1228 = vmatprep.subr.mxu0 %v417_v14  ;;  %p1513_p3 = pnand %p1512_p10, %p1506_p12 }
  0xa2   : > { %1229 = vmatpush3.msra.mxu0 %v417_v14  ;;  %1235 = vmatprep.subr.mxu1 %v837_v15 }
  0xa3   : > { %1230 = vmatprep.subr.mxu0 %v416_v16 }
  0xa4   : > { %1231 = vmatpush3.msra.mxu0 %v416_v16 }
 0x15b   : > { %v1206_v18 = vpop.f32.mrf.mxu0 }
 0x15c   : > { %v1213_v19 = vpop.f32.mrf.mxu1 }
 0x15d   : > { %v491_v20 = vpop.f32.mrf.mxu0  ;;  %v667_v23 = vsub.f32 %v1206_v18, %v1213_v19 }
 0x15e   : > { %v572_v21 = vpop.f32.mrf.mxu1 }
 0x15f   : > { %v666_v22 = vsub.f32 %v491_v20, %v572_v21 }
 0x160   : > { %v1220_v24 = vpop.f32.mrf.mxu0 }
 0x161   : > { %1225 = vmatprep.mubr.msk.f32.mxu1 %vm418_vm0, %v666_v22  ;;  %v669_v25 = vsub.f32 %v1220_v24, %v1206_v18 }
 0x162   : > { %1226 = vmatmul.mubr.msk.f32.vlgmr.msra.gmra.mxu1 %vm418_vm0, %v667_v23  ;;  %v657_v26 = vpop.f32.mrf.mxu0 }
 0x163   : > { %1236 = vmatpush3.msra.mxu1 %v837_v15  ;;  %v668_v27 = vsub.f32 %v657_v26, %v491_v20  ;;  %v671_v28 = vsub.f32 %v669_v25, %v1213_v19 }
 0x164   : > { %1237 = vmatprep.subr.mxu1 %v836_v17 }
 0x165   : > { %1238 = vmatpush3.msra.mxu1 %v836_v17  ;;  %v670_v29 = vsub.f32 %v668_v27, %v572_v21  ;;  %v835_v31 = vadd.f32 %v671_v28, %v667_v23 }
 0x167   : > { %v834_v30 = vadd.f32 %v670_v29, %v666_v22  ;;  %1232 = vmatprep.mubr.msk.f32.mxu0 %vm418_vm0, %v670_v29 }
 0x168   : > { %1233 = vmatmul.mubr.msk.f32.vlgmr.msra.gmra.mxu0 %vm418_vm0, %v671_v28 }
 0x169   : > { %1239 = vmatprep.mubr.msk.f32.mxu1 %vm418_vm0, %v834_v30 }
 0x16a   : > { %1240 = vmatmul.mubr.msk.f32.vlgmr.msra.gmra.mxu1 %vm418_vm0, %v835_v31 }
 0x222   : > { %v1227_v32 = vpop.f32.mrf.mxu1 }
 0x224   : > { %v744_v33 = vpop.f32.mrf.mxu1 }
 0x228   : > { %v1234_v34 = vpop.f32.mrf.mxu0 }
 0x229   : > { %v920_v35 = vsub.f32 %v1227_v32, %v1234_v34 }
 0x22a   : > { %v825_v36 = vpop.f32.mrf.mxu0  ;;  %v1241_v37 = vpop.f32.mrf.mxu1 }
 0x22b   : > { %926 = vst.msk [vmem:[%s398_s3 + $0x8] sm:$0xff] %vm418_vm0, %v920_v35  ;;  %v919_v38 = vsub.f32 %v744_v33, %v825_v36  ;;  %v922_v39 = vsub.f32 %v1241_v37, %v1227_v32 }
 0x22c   : > { %v910_v40 = vpop.f32.mrf.mxu1 }
 0x22d   : > { %925 = vst.msk [vmem:[%s398_s3] sm:$0xff] %vm418_vm0, %v919_v38  ;;  %v924_v41 = vsub.f32 %v922_v39, %v1234_v34  ;;  %v921_v42 = vsub.f32 %v910_v40, %v744_v33 }
 0x22e   : > { %1516 = shalt.err (!%p1513_p3)
}
 0x22f   : > { %s1517_s13 = scalar_lea.hbm %s1915_s11, 256  ;;  %s1521_s15 = scalar_lea.hbm %s2014_s6, 512 }
 0x230   : > { %p1518_p8 = scmp.ne.s32.totalorder %s1915_s11, %s1517_s13  ;;  %p1522_p7 = scmp.lt.s32.totalorder %s1915_s11, %s2014_s6 }
 0x231   : > { %p1523_p1 = scmp.lt.s32.totalorder %s1521_s15, %s1517_s13 }
 0x232   : > { %p1519_p2 = pnand %p1518_p8, %p2046_p11 }
 0x233   : > { %p1524_p13 = por %p1523_p1, %p1522_p7 }
 0x234   : > { %p1520_p9 = pneg %p1519_p2 }
 0x236   : > { %p1525_p0 = pnand %p1524_p13, %p1520_p9 }
 0x238   : > { %1528 = shalt.err (!%p1525_p0)
}
 0x239   : > { %s1624_s4 = smov 128   ;;  %s1625_s20 = smov 8   ;;  %928 = vst.msk [vmem:[%s1921_s14 + $0x8] sm:$0xff] %vm418_vm0, %v924_v41  ;;  %v923_v43 = vsub.f32 %v921_v42, %v825_v36 }
 0x23a   : > { %1262 = dma.vmem_to_hbm [thread:$0]  (%p2046_p11), %s1917_s16, 256, %s1915_s11, %s930_s17, %s1624_s4, %s1624_s4, %s1625_s20  }
 0x23b   : > { %s1958_s22 = scalar_lea.hbm %s2015_s7, %s1174_s30  ;;  %927 = vst.msk [vmem:[%s1921_s14] sm:$0xff] %vm418_vm0, %v923_v43  ;;  %s935_s13 = scalar_lea.sflag [#allocation15], %s1867_s0 }
 0x23c   : > { %s1529_s9 = scalar_lea.vmem %s1962_s2, 256  ;;  %s1626_s28 = smov [#allocation14]  }
 0x23d   : > { %p1530_p5 = scmp.ne.s32.totalorder %s1962_s2, %s1529_s9  ;;  %s1533_s16 = sshll.u32 %s1626_s28, 4  ;;  %s1534_s16 = int_to_ptr.vmem [resolvable:$false] %s1533_s16 }
 0x23e   : > { %s1535_s11 = scalar_lea.vmem %s1534_s16, 512  ;;  %p1536_p6 = scmp.lt.s32.totalorder %s1962_s2, %s1534_s16 }
 0x23f   : > { %p1531_p12 = pnand %p1530_p5, %p2046_p11  ;;  %p1537_p10 = scmp.lt.s32.totalorder %s1535_s11, %s1529_s9 }
 0x241   : > { %p1532_p4 = pneg %p1531_p12  ;;  %p1538_p3 = por %p1537_p10, %p1536_p6 }
 0x243   : > { %p1539_p8 = pnand %p1538_p3, %p1532_p4 }
 0x245   : > { %1542 = shalt.err (!%p1539_p8)
}
 0x246   : > { %s1543_s30 = scalar_lea.hbm %s1958_s22, 256  ;;  %s1547_s17 = scalar_lea.hbm %s2015_s7, 512 }
 0x247   : > { %p1544_p2 = scmp.ne.s32.totalorder %s1958_s22, %s1543_s30  ;;  %p1548_p1 = scmp.lt.s32.totalorder %s1958_s22, %s2015_s7 }
 0x248   : > { %p1549_p13 = scmp.lt.s32.totalorder %s1547_s17, %s1543_s30 }
 0x249   : > { %p1545_p9 = pnand %p1544_p2, %p2046_p11 }
 0x24a   : > { %p1550_p0 = por %p1549_p13, %p1548_p1 }
 0x24b   : > { %p1546_p7 = pneg %p1545_p9 }
 0x24d   : > { %p1551_p5 = pnand %p1550_p0, %p1546_p7 }
 0x24f   : > { %1554 = shalt.err (!%p1551_p5)
}
 0x250   : > { %1263 = dma.vmem_to_hbm [thread:$0]  (%p2046_p11), %s1962_s2, 256, %s1958_s22, %s935_s13, %s1624_s4, %s1624_s4, %s1625_s20  }
 0x251 PF: > { %s979_s3 = sand.u32 1, %s1601_s24   ;;  %p2047_p12 = scmp.ne.s32.totalorder %s2028_s8, 0 }
 0x252   : > { %p2048_p4 = scmp.ge.s32.totalorder %s1613_s27, 2  ;;  %s980_s12 = scalar_lea.sflag [#allocation4], %s979_s3 }
 0x254   : > { %p1287_p6 = pnand %p2048_p4, %p2047_p12 }
 0x256   : > { %p1288_p10 = pneg %p1287_p6 }
 0x258   : > { %1592 = dma.done.wait (%p1288_p10), %s980_s12, 256  }
 0x259   : > { %1594 = vsyncadd (%p1288_p10), %s980_s12, 4294967040  ;;  %s989_s18 = scalar_lea.sflag [#allocation15], %s979_s3 }
 0x25a   : > { %1596 = dma.done.wait (%p1288_p10), %s989_s18, 256  }
 0x25b   : > { %1598 = vsyncadd (%p1288_p10), %s989_s18, 4294967040  ;;  %p29_p11 = scmp.ge.s32.totalorder %s1767_s21, 4   ;;  %s2049_s24 = smov %s1605_s25 }
 0x25c   : > { %s2050_s25 = smov %s1609_s26  ;;  %s2051_s26 = smov %s1783_s29 }
 0x25d   : > { %s2052_s27 = smov %s1767_s21  ;;  %31 = sbr.rel (!%p29_p11) target bundleno = 16 (0x10), region = 135 }
 0x262   :  { %994 = vsyncpa [#allocation3], 1 }
 0x263   :  { %996 = vsyncpa [#allocation3 + $0x1], 1 }
 0x264   :  { %997 = vsyncpa [#allocation6], 1 }
 0x265   :  { %999 = vsyncpa [#allocation6 + $0x1], 1 }
 0x266   :  { %1000 = vsyncpa [#allocation9], 1 }
 0x267   :  { %1001 = vsyncpa [#allocation12], 1 }
 0x268   :  { %1002 = vsyncpa [#allocation4], 1 }
 0x269   :  { %1004 = vsyncpa [#allocation4 + $0x1], 1 }
 0x26a   :  { %1005 = vsyncpa [#allocation15], 1 }
 0x26b   :  { %1007 = vsyncpa [#allocation15 + $0x1], 1 }

</bundles_post_ra>
